<compile_context>
chip_gen: v7x
topology: tpu7x:2x2x1
jax: 0.10.0
libtpu: 0.0.40
codegen_flags: <defaults>
</compile_context>

<pallas_src>
import math

import jax
import jax.numpy as jnp
from jax import lax
from jax.experimental import pallas as pl
from jax.experimental.pallas import tpu as pltpu


def _round_up(n: int, m: int) -> int:
    return ((n + m - 1) // m) * m


def _l2norm_log_kernel(x_ref, o_ref):
    """Per-row log(L2 norm) of a (block_rows, D) tile, written lane-dense."""
    x = x_ref[...].astype(jnp.float32)          # (bm, D)
    xsq = x * x                                 # VPU elementwise square

    # Row-wise sum of squares via one MXU op: contract the D dims of
    # ones(1, D) and xsq(bm, D) -> (1, bm). The result is naturally lane-major,
    # so the output store below is a full-width (128-lane) store.
    ones = jnp.ones((1, x.shape[-1]), dtype=jnp.float32)
    sumsq = lax.dot_general(
        ones, xsq,
        dimension_numbers=(((1,), (1,)), ((), ())),
        preferred_element_type=jnp.float32,
    )                                           # (1, bm)

    # log(||x||_2) = 0.5 * log(sum_d x_d^2): single EUP log per row.
    out = 0.5 * jnp.log(sumsq)                  # (1, bm)
    o_ref[...] = out[None].astype(o_ref.dtype)  # (1, 1, bm)


def normalize_and_log(x, *, block_rows: int | None = None):
    """JAX/Pallas equivalent of NormailizeAndLog.forward: log(norm(x, dim=-1))."""
    if x.ndim < 1:
        raise ValueError("input must have at least one dimension")

    lead_shape = x.shape[:-1]
    D = int(x.shape[-1])
    M = int(math.prod(lead_shape)) if lead_shape else 1
    out_dtype = x.dtype

    x2 = x.reshape(M, D)

    in_itemsize = jnp.dtype(x.dtype).itemsize
    out_itemsize = jnp.dtype(out_dtype).itemsize

    if block_rows is None:
        # ~2 MiB input tiles; double-buffered in+out stays well within the scoped
        # VMEM budget on every generation (including v7x's halved VMEM).
        target_bytes = 2 * 1024 * 1024
        rows_cap = max(128, (target_bytes // max(1, D * in_itemsize)) // 128 * 128)
        bm = min(rows_cap, _round_up(M, 128))
    else:
        assert block_rows % 128 == 0, "block_rows must be a multiple of 128"
        bm = block_rows

    Mp = _round_up(M, bm)
    if Mp != M:
        # Pad with ones so padded (discarded) rows have a finite log-norm.
        x2 = jnp.pad(x2, ((0, Mp - M), (0, 0)), constant_values=1)
    G = Mp // bm

    out3 = pl.pallas_call(
        _l2norm_log_kernel,
        out_shape=jax.ShapeDtypeStruct((G, 1, bm), out_dtype),
        grid=(G,),
        in_specs=[pl.BlockSpec((bm, D), lambda i: (i, 0))],
        out_specs=pl.BlockSpec((1, 1, bm), lambda i: (i, 0, 0)),
        compiler_params=pltpu.CompilerParams(
            dimension_semantics=("parallel",),
        ),
        cost_estimate=pl.CostEstimate(
            flops=3 * Mp * D,                  # square + MAC per element
            transcendentals=Mp,                # one log per row
            bytes_accessed=Mp * D * in_itemsize + Mp * out_itemsize,
        ),
    )(x2)

    return out3.reshape(Mp)[:M].reshape(lead_shape)


if __name__ == "__main__":
    key = jax.random.PRNGKey(0)
    k1, k2 = jax.random.split(key)

    # Small NCHW-style input: norm over the last (W) dim -> output shape (2, 4, 16).
    x = jax.random.normal(k1, (2, 4, 16, 16), dtype=jnp.float32)
    out = jax.block_until_ready(normalize_and_log(x))
    ref = jnp.log(jnp.linalg.norm(x, axis=-1))
    assert out.shape == x.shape[:-1]
    assert out.dtype == x.dtype
    assert jnp.allclose(out, ref, rtol=1e-5, atol=1e-5)

    # Exercise the multi-tile grid path (G > 1) with a forced small row block.
    y = jax.random.normal(k2, (8, 64, 32), dtype=jnp.float32)
    out_y = jax.block_until_ready(normalize_and_log(y, block_rows=128))
    ref_y = jnp.log(jnp.linalg.norm(y, axis=-1))
    assert out_y.shape == y.shape[:-1]
    assert out_y.dtype == y.dtype
    assert jnp.allclose(out_y, ref_y, rtol=1e-5, atol=1e-5)

    print("KERNEL_OK")
</pallas_src>

<mosaic_0001>
module attributes {stable_mosaic.version = 11 : i64} {
  func.func @_l2norm_log_kernel(%arg0: i32, %arg1: memref<128x16xf32, #tpu.memory_space<vmem>>, %arg2: memref<1x1x128xf32, #tpu.memory_space<vmem>>) attributes {dimension_semantics = [#tpu.dimension_semantics<parallel>], iteration_bounds = array<i64: 1>, scalar_prefetch = 0 : i64, scratch_operands = 0 : i64, tpu.core_type = #tpu.core_type<tc>, window_params = [{transform_indices = @transform_0, window_bounds = array<i64: 128, 16>}, {transform_indices = @transform_1, window_bounds = array<i64: 1, 1, 128>}]} {
    %c0 = arith.constant 0 : index
    %c0_0 = arith.constant 0 : index
    %0 = vector.load %arg1[%c0, %c0_0] : memref<128x16xf32, #tpu.memory_space<vmem>>, vector<128x16xf32>
    %1 = arith.mulf %0, %0 : vector<128x16xf32>
    %cst = arith.constant 1.000000e+00 : f32
    %2 = vector.broadcast %cst : f32 to vector<1x16xf32>
    %cst_1 = arith.constant dense<0.000000e+00> : vector<1x128xf32>
    %3 = tpu.matmul %2, %1, %cst_1 {dimension_numbers = #tpu.dot_dimension_numbers<[1], [1], [0], [0], [0, 0, 1, 0], [], []>} : vector<1x16xf32>, vector<128x16xf32>, vector<1x128xf32> -> vector<1x128xf32>
    %4 = math.log %3 : vector<1x128xf32>
    %cst_2 = arith.constant 5.000000e-01 : f32
    %5 = vector.broadcast %cst_2 : f32 to vector<1x128xf32>
    %6 = arith.mulf %5, %4 : vector<1x128xf32>
    %7 = vector.shape_cast %6 : vector<1x128xf32> to vector<1x1x128xf32>
    %c0_3 = arith.constant 0 : index
    %c0_4 = arith.constant 0 : index
    %c0_5 = arith.constant 0 : index
    %8 = vector.load %arg2[%c0_3, %c0_4, %c0_5] : memref<1x1x128xf32, #tpu.memory_space<vmem>>, vector<1x1x128xf32>
    tpu.vector_store %arg2[%c0_3, %c0_4, %c0_5], %7 {strides = array<i32>} : memref<1x1x128xf32, #tpu.memory_space<vmem>>, vector<1x1x128xf32>,
    return
  }
  func.func @transform_0(%arg0: i32) -> (i32, i32) {
    %c0_i32 = arith.constant 0 : i32
    %c0_i32_0 = arith.constant 0 : i32
    return %arg0, %c0_i32 : i32, i32
  }
  func.func @transform_1(%arg0: i32) -> (i32, i32, i32) {
    %c0_i32 = arith.constant 0 : i32
    %c0_i32_0 = arith.constant 0 : i32
    %c0_i32_1 = arith.constant 0 : i32
    return %arg0, %c0_i32, %c0_i32_0 : i32, i32, i32
  }
}

</mosaic_0001>

<bundles_post_ra>
// kernel: tpu_custom_call.1
= control target key start
LH: loop header
LB: loop body
LE: loop exit
PB: predicated region body
PF: predicated region fallthrough
CT: control target
= control target key end

     0   :  { %vm41_vm0 = vcmask 130048   ;;  %v313_v2 = vmov 0.0|0.0   ;;  %vm314_vm2 = vmmov 0   ;;  %v315_v8 = vmov 0.0   ;;  %s411_s0 = inlined_call_operand.vmem [shape: f32[128,16], index: 0, kind: input, shape index: {}]   ;;  %s412_s1 = inlined_call_operand.hbm [shape: f32[1,1,128], index: 1, kind: output, shape index: {}]  }
   0x1   :  { %v9_v0 = vld [vmem:[%s411_s0] sm:$0xff]  ;;  %v10_v1 = vld [vmem:[%s411_s0 + $0x8] sm:$0xff]  ;;  %250 = vmatprep.subr.bf16.mxu0 %v313_v2  ;;  %vm336_vm1 = vmpackc.low %vm41_vm0, %vm41_vm0  ;;  %247 = vmatprep.mubr.msk.f32.mxu0 %vm314_vm2, %v315_v8 }
   0x2   :  { %v25_v3 = vmul.f32 %v9_v0, %v9_v0  ;;  %v26_v4 = vmul.f32 %v10_v1, %v10_v1  ;;  %v11_v6 = vld [vmem:[%s411_s0 + $0x10] sm:$0xff]  ;;  %v12_v7 = vld [vmem:[%s411_s0 + $0x18] sm:$0xff] }
   0x3   :  { %v27_v10 = vmul.f32 %v11_v6, %v11_v6  ;;  %v28_v11 = vmul.f32 %v12_v7, %v12_v7 }
   0x4   :  { %v251_v9 = vpack.c.bf16 %v26_v4, %v25_v3 }
   0x6   :  { %253 = vmatpush3.bf16.xpose.msk.msra.mxu0 %vm336_vm1, %v251_v9 }
   0x7   :  { %6 = vsyncpa [#allocation3], 0  ;;  %254 = vmatprep.subr.bf16.mxu0 %v313_v2  ;;  %v255_v12 = vpack.c.bf16 %v28_v11, %v27_v10  ;;  %v13_v13 = vld [vmem:[%s411_s0 + $0x20] sm:$0xff]  ;;  %v14_v14 = vld [vmem:[%s411_s0 + $0x28] sm:$0xff]  ;;  %v316_v43 = vmov 1.0   ;;  %s317_s9 = smov [#allocation2]  }
   0x8   :  { %v29_v15 = vmul.f32 %v13_v13, %v13_v13  ;;  %v30_v16 = vmul.f32 %v14_v14, %v14_v14  ;;  %v15_v18 = vld [vmem:[%s411_s0 + $0x30] sm:$0xff]  ;;  %v16_v19 = vld [vmem:[%s411_s0 + $0x38] sm:$0xff]  ;;  %v17_v23 = vld [vmem:[%s411_s0 + $0x40] sm:$0xff]  ;;  %s173_s10 = sshll.u32 %s317_s9, 4  ;;  %s174_s10 = int_to_ptr.vmem [resolvable:$true] %s173_s10 }
   0x9   :  { %v31_v20 = vmul.f32 %v15_v18, %v15_v18  ;;  %v32_v21 = vmul.f32 %v16_v19, %v16_v19  ;;  %v18_v24 = vld [vmem:[%s411_s0 + $0x48] sm:$0xff]  ;;  %v33_v25 = vmul.f32 %v17_v23, %v17_v23  ;;  %v19_v28 = vld [vmem:[%s411_s0 + $0x50] sm:$0xff]  ;;  %v20_v29 = vld [vmem:[%s411_s0 + $0x58] sm:$0xff]  ;;  %s293_s11 = scalar_lea.vmem %s174_s10, 32  ;;  %p294_p1 = scmp.lt.s32.totalorder %s174_s10, %s174_s10 }
   0xa   :  { %v259_v17 = vpack.c.bf16 %v30_v16, %v29_v15  ;;  %v34_v26 = vmul.f32 %v18_v24, %v18_v24  ;;  %v35_v30 = vmul.f32 %v19_v28, %v19_v28  ;;  %v36_v31 = vmul.f32 %v20_v29, %v20_v29  ;;  %v21_v33 = vld [vmem:[%s411_s0 + $0x60] sm:$0xff]  ;;  %v22_v34 = vld [vmem:[%s411_s0 + $0x68] sm:$0xff]  ;;  %v23_v38 = vld [vmem:[%s411_s0 + $0x70] sm:$0xff] }
   0xb   :  { %v263_v22 = vpack.c.bf16 %v32_v21, %v31_v20  ;;  %v37_v35 = vmul.f32 %v21_v33, %v21_v33  ;;  %v38_v36 = vmul.f32 %v22_v34, %v22_v34  ;;  %v24_v39 = vld [vmem:[%s411_s0 + $0x78] sm:$0xff]  ;;  %v39_v40 = vmul.f32 %v23_v38, %v23_v38  ;;  %s289_s0 = scalar_lea.vmem %s174_s10, 16 }
   0xc   :  { %v267_v27 = vpack.c.bf16 %v34_v26, %v33_v25  ;;  %v271_v32 = vpack.c.bf16 %v36_v31, %v35_v30  ;;  %v40_v41 = vmul.f32 %v24_v39, %v24_v39  ;;  %p290_p0 = scmp.ne.s32.totalorder %s174_s10, %s289_s0  ;;  %p295_p2 = scmp.lt.s32.totalorder %s293_s11, %s289_s0 }
   0xd   :  { %v275_v37 = vpack.c.bf16 %v38_v36, %v37_v35 }
   0xe   :  { %257 = vmatpush3.bf16.xpose.msk.msra.mxu0 %vm336_vm1, %v255_v12  ;;  %v279_v42 = vpack.c.bf16 %v40_v41, %v39_v40  ;;  %p296_p3 = por %p295_p2, %p294_p1 }
   0xf   :  { %258 = vmatprep.subr.bf16.mxu0 %v313_v2 }
  0x10   :  { %p297_p4 = pnand %p296_p3, %p290_p0 }
  0x16   :  { %261 = vmatpush3.bf16.xpose.msk.msra.mxu0 %vm336_vm1, %v259_v17 }
  0x17   :  { %262 = vmatprep.subr.bf16.mxu0 %v313_v2 }
  0x1e   :  { %265 = vmatpush3.bf16.xpose.msk.msra.mxu0 %vm336_vm1, %v263_v22 }
  0x1f   :  { %266 = vmatprep.subr.bf16.mxu0 %v313_v2 }
  0x26   :  { %269 = vmatpush3.bf16.xpose.msk.msra.mxu0 %vm336_vm1, %v267_v27 }
  0x27   :  { %270 = vmatprep.subr.bf16.mxu0 %v313_v2 }
  0x2e   :  { %273 = vmatpush3.bf16.xpose.msk.msra.mxu0 %vm336_vm1, %v271_v32 }
  0x2f   :  { %274 = vmatprep.subr.bf16.mxu0 %v313_v2 }
  0x36   :  { %277 = vmatpush3.bf16.xpose.msk.msra.mxu0 %vm336_vm1, %v275_v37 }
  0x37   :  { %278 = vmatprep.subr.bf16.mxu0 %v313_v2 }
  0x3e   :  { %281 = vmatpush3.bf16.xpose.msk.msra.mxu0 %vm336_vm1, %v279_v42 }
  0x45   :  { %248 = vmatmul.mubr.msk.f32.vlgmr.msra.gmra.mrb[0].mxu0 %vm41_vm0, %v316_v43 }
 0x118   :  { %v159_v44 = vpop.f32.mrb[0].mxu0 }
 0x119   :  { %287 = vlog2.f32 %v159_v44  ;;  %v249_v45 = vpop.f32.mrb[1].mxu0 }
 0x123   :  { %v288_v46 = vpop.eup %287 }
 0x124   :  { %v164_v47 = vmul.f32 0.6931472, %v288_v46 }
 0x126   :  { %v165_v48 = vmul.f32 0.5, %v164_v47 }
 0x128   :  { %166 = vst [vmem:[#allocation2] sm:$0x1] %v165_v48 }
 0x129   :  { %300 = shalt.err (!%p297_p4)
}
 0x12a   :  { %s301_s14 = scalar_lea.hbm %s412_s1, 16 }
 0x12b   :  { %p302_p5 = scmp.ne.s32.totalorder %s412_s1, %s301_s14  ;;  %p305_p6 = scmp.lt.u32.totalorder %s301_s14, %s412_s1 }
 0x12d   :  { %p307_p7 = pnand %p305_p6, %p302_p5 }
 0x12f   :  { %310 = shalt.err (!%p307_p7)
}
 0x130   :  { %176 = dma.vmem_to_hbm [thread:$0]  %s174_s10, 16, %s412_s1, [#allocation3]  }
 0x131   :  { %311 = dma.done.wait [#allocation3], 16  }
 0x132   :  { %312 = vsyncadd [#allocation3], 4294967280 }
 0x133   :  { %180 = vsyncpa [#allocation3], 1 }

</bundles_post_ra>
